<compile_context>
chip_gen: v6e
topology: v6e:2x2x1
jax: 0.10.0
libtpu: 0.0.40
codegen_flags: <defaults>
</compile_context>

<pallas_src>
import functools

import jax
import jax.numpy as jnp
from jax.experimental import pallas as pl
from jax.experimental.pallas import tpu as pltpu


def _round_up(x, m):
    return (x + m - 1) // m * m


def _ce_soft_kernel(x_ref, t_ref, o_ref,
                    m_acc, l_acc, dot_acc, tsum_acc,
                    *, n_cols, tile_c, mask_cols):
    """Grid = (row_tiles ["parallel"], class_tiles ["arbitrary"])."""
    ci = pl.program_id(1)

    # Reset the per-row running accumulators at the start of each row tile.
    @pl.when(ci == 0)
    def _():
        m_acc[...] = jnp.full(m_acc.shape, -jnp.inf, jnp.float32)
        l_acc[...] = jnp.zeros(l_acc.shape, jnp.float32)
        dot_acc[...] = jnp.zeros(dot_acc.shape, jnp.float32)
        tsum_acc[...] = jnp.zeros(tsum_acc.shape, jnp.float32)

    x = x_ref[...].astype(jnp.float32)          # (tile_n, tile_c)
    t = t_ref[...].astype(jnp.float32)          # (tile_n, tile_c)

    if mask_cols:
        # Ragged last class tile: discard out-of-range columns.
        col = jax.lax.broadcasted_iota(jnp.int32, x.shape, 1) + ci * tile_c
        cvalid = col < n_cols
        xm = jnp.where(cvalid, x, -jnp.inf)     # neutral for max / exp
        tx = jnp.where(cvalid, t * x, 0.0)      # neutral for sums
        tv = jnp.where(cvalid, t, 0.0)
    else:
        xm = x
        tx = t * x
        tv = t

    # Online log-sum-exp update (per row, over class tiles).
    blk_max = jnp.max(xm, axis=-1, keepdims=True)        # (tile_n, 1)
    m_old = m_acc[...]
    m_new = jnp.maximum(m_old, blk_max)
    l_acc[...] = (l_acc[...] * jnp.exp(m_old - m_new)
                  + jnp.sum(jnp.exp(xm - m_new), axis=-1, keepdims=True))
    m_acc[...] = m_new

    # Running sum_c(t * x) and sum_c(t).
    dot_acc[...] += jnp.sum(tx, axis=-1, keepdims=True)
    tsum_acc[...] += jnp.sum(tv, axis=-1, keepdims=True)

    @pl.when(ci == pl.num_programs(1) - 1)
    def _():
        lse = m_acc[...] + jnp.log(l_acc[...])            # (tile_n, 1)
        # loss_r = sum_c -t*(x - lse) = lse * sum_c t - sum_c t*x
        o_ref[...] = lse * tsum_acc[...] - dot_acc[...]


def cross_entropy_soft_label(logits, target, *, reduction="mean"):
    """Pallas TPU implementation of CrossEntropyLossWithSoftLabel.forward.

    logits, target: (N, C) float arrays.  Returns scalar f32 for
    reduction in {'mean', 'sum'}, or per-row (N,) f32 for 'none'.
    """
    assert logits.shape == target.shape and logits.ndim == 2
    n, c = logits.shape

    item_x = jnp.dtype(logits.dtype).itemsize
    item_t = jnp.dtype(target.dtype).itemsize
    # Sublane multiple required by the narrower input dtype (f32:8, bf16:16, 8-bit:32).
    sub = {4: 8, 2: 16, 1: 32}.get(min(item_x, item_t), 8)

    # Class tile: full C if it fits, else a lane-dense 2048-wide tile (online LSE).
    max_tc = 2048
    tc = c if c <= max_tc else max_tc
    n_ct = pl.cdiv(c, tc)
    mask_cols = (c % tc) != 0

    # Row tile: biggest that keeps each input block around ~4 MiB (so 2 inputs x
    # 2 pipeline buffers stays well inside 64 MiB VMEM on v7x), capped at 1024.
    block_budget = 4 * 1024 * 1024
    rows_budget = max(sub, (block_budget // (tc * max(item_x, item_t))) // sub * sub)
    tile_n = int(min(1024, rows_budget, _round_up(n, sub)))
    n_rt = pl.cdiv(n, tile_n)
    out_rows = n_rt * tile_n                    # padded rows sliced off below

    # Explicit VMEM budget: double-buffered inputs + output block + scratch (+margin).
    vmem_needed = 2 * tile_n * tc * (item_x + item_t)       # pipelined input blocks
    vmem_needed += 2 * tile_n * 128 * 4                      # output block (lane-padded)
    vmem_needed += 4 * tile_n * 128 * 4                      # 4 scratch accumulators
    vmem_limit = min(max(int(vmem_needed * 1.5) + (4 << 20), 32 << 20), 48 << 20)

    kernel = functools.partial(_ce_soft_kernel, n_cols=c, tile_c=tc,
                               mask_cols=mask_cols)

    out = pl.pallas_call(
        kernel,
        out_shape=jax.ShapeDtypeStruct((out_rows, 1), jnp.float32),
        grid_spec=pltpu.PrefetchScalarGridSpec(
            num_scalar_prefetch=0,
            grid=(n_rt, n_ct),
            in_specs=[
                pl.BlockSpec((tile_n, tc), lambda i, j: (i, j)),
                pl.BlockSpec((tile_n, tc), lambda i, j: (i, j)),
            ],
            out_specs=pl.BlockSpec((tile_n, 1), lambda i, j: (i, 0)),
            scratch_shapes=[pltpu.VMEM((tile_n, 1), jnp.float32)
                            for _ in range(4)],
        ),
        compiler_params=pltpu.CompilerParams(
            dimension_semantics=("parallel", "arbitrary"),
            vmem_limit_bytes=vmem_limit,
        ),
    )(logits, target)

    per_row = out[:n, 0]
    if reduction == "mean":
        return jnp.mean(per_row)
    if reduction == "sum":
        return jnp.sum(per_row)
    return per_row                               # reduction='none'


def _reference(logits, target, reduction="mean"):
    log_probs = jax.nn.log_softmax(logits.astype(jnp.float32), axis=-1)
    loss = jnp.sum(-target.astype(jnp.float32) * log_probs, axis=-1)
    if reduction == "mean":
        return jnp.mean(loss)
    if reduction == "sum":
        return jnp.sum(loss)
    return loss


if __name__ == "__main__":
    key = jax.random.PRNGKey(0)

    # Case 1: small, C < 128, single class tile.
    k1, k2, k3, k4 = jax.random.split(key, 4)
    N, C = 64, 32
    logits = jax.random.normal(k1, (N, C), dtype=jnp.float32)
    target = jax.nn.softmax(jax.random.normal(k2, (N, C), dtype=jnp.float32), -1)
    loss = jax.block_until_ready(cross_entropy_soft_label(logits, target))
    ref = _reference(logits, target)
    assert jnp.allclose(loss, ref, rtol=1e-5, atol=1e-5), (loss, ref)

    # Case 2: exercises class-axis tiling + online LSE + ragged C and ragged N.
    N2, C2 = 50, 2304
    logits2 = jax.random.normal(k3, (N2, C2), dtype=jnp.float32)
    target2 = jax.nn.softmax(jax.random.normal(k4, (N2, C2), dtype=jnp.float32), -1)
    loss2 = jax.block_until_ready(cross_entropy_soft_label(logits2, target2))
    ref2 = _reference(logits2, target2)
    assert jnp.allclose(loss2, ref2, rtol=1e-5, atol=1e-5), (loss2, ref2)

    print("KERNEL_OK")
</pallas_src>

<mosaic_0001>
module attributes {stable_mosaic.version = 11 : i64} {
  func.func @_ce_soft_kernel(%arg0: i32, %arg1: i32, %arg2: memref<64x32xf32, #tpu.memory_space<vmem>>, %arg3: memref<64x32xf32, #tpu.memory_space<vmem>>, %arg4: memref<64x1xf32, #tpu.memory_space<vmem>>, %arg5: memref<64x1xf32, #tpu.memory_space<vmem>>, %arg6: memref<64x1xf32, #tpu.memory_space<vmem>>, %arg7: memref<64x1xf32, #tpu.memory_space<vmem>>, %arg8: memref<64x1xf32, #tpu.memory_space<vmem>>) attributes {dimension_semantics = [#tpu.dimension_semantics<parallel>, #tpu.dimension_semantics<arbitrary>], iteration_bounds = array<i64: 1, 1>, scalar_prefetch = 0 : i64, scratch_operands = 4 : i64, tpu.core_type = #tpu.core_type<tc>, window_params = [{transform_indices = @transform_0, window_bounds = array<i64: 64, 32>}, {transform_indices = @transform_1, window_bounds = array<i64: 64, 32>}, {transform_indices = @transform_2, window_bounds = array<i64: 64, 1>}]} {
    %c0_i32 = arith.constant 0 : i32
    %0 = arith.cmpi eq, %arg1, %c0_i32 : i32
    %1 = arith.extui %0 : i1 to i32
    %c0_i32_0 = arith.constant 0 : i32
    %2 = arith.cmpi ne, %1, %c0_i32_0 : i32
    scf.if %2 {
      %cst_25 = arith.constant 0xFF800000 : f32
      %35 = vector.broadcast %cst_25 : f32 to vector<64x1xf32>
      %c0_26 = arith.constant 0 : index
      %c0_27 = arith.constant 0 : index
      %36 = vector.load %arg5[%c0_26, %c0_27] : memref<64x1xf32, #tpu.memory_space<vmem>>, vector<64x1xf32>
      tpu.vector_store %arg5[%c0_26, %c0_27], %35 {strides = array<i32>} : memref<64x1xf32, #tpu.memory_space<vmem>>, vector<64x1xf32>,
      %cst_28 = arith.constant 0.000000e+00 : f32
      %37 = vector.broadcast %cst_28 : f32 to vector<64x1xf32>
      %c0_29 = arith.constant 0 : index
      %c0_30 = arith.constant 0 : index
      %38 = vector.load %arg6[%c0_29, %c0_30] : memref<64x1xf32, #tpu.memory_space<vmem>>, vector<64x1xf32>
      tpu.vector_store %arg6[%c0_29, %c0_30], %37 {strides = array<i32>} : memref<64x1xf32, #tpu.memory_space<vmem>>, vector<64x1xf32>,
      %cst_31 = arith.constant 0.000000e+00 : f32
      %39 = vector.broadcast %cst_31 : f32 to vector<64x1xf32>
      %c0_32 = arith.constant 0 : index
      %c0_33 = arith.constant 0 : index
      %40 = vector.load %arg7[%c0_32, %c0_33] : memref<64x1xf32, #tpu.memory_space<vmem>>, vector<64x1xf32>
      tpu.vector_store %arg7[%c0_32, %c0_33], %39 {strides = array<i32>} : memref<64x1xf32, #tpu.memory_space<vmem>>, vector<64x1xf32>,
      %cst_34 = arith.constant 0.000000e+00 : f32
      %41 = vector.broadcast %cst_34 : f32 to vector<64x1xf32>
      %c0_35 = arith.constant 0 : index
      %c0_36 = arith.constant 0 : index
      %42 = vector.load %arg8[%c0_35, %c0_36] : memref<64x1xf32, #tpu.memory_space<vmem>>, vector<64x1xf32>
      tpu.vector_store %arg8[%c0_35, %c0_36], %41 {strides = array<i32>} : memref<64x1xf32, #tpu.memory_space<vmem>>, vector<64x1xf32>,
    } else {
    }
    %c0 = arith.constant 0 : index
    %c0_1 = arith.constant 0 : index
    %3 = vector.load %arg2[%c0, %c0_1] : memref<64x32xf32, #tpu.memory_space<vmem>>, vector<64x32xf32>
    %c0_2 = arith.constant 0 : index
    %c0_3 = arith.constant 0 : index
    %4 = vector.load %arg3[%c0_2, %c0_3] : memref<64x32xf32, #tpu.memory_space<vmem>>, vector<64x32xf32>
    %5 = arith.mulf %4, %3 : vector<64x32xf32>
    %cst = arith.constant dense<0xFF800000> : vector<64xf32>
    %6 = vector.multi_reduction <maximumf>, %3, %cst [1] : vector<64x32xf32> to vector<64xf32>
    %7 = vector.shape_cast %6 : vector<64xf32> to vector<64x1xf32>
    %c0_4 = arith.constant 0 : index
    %c0_5 = arith.constant 0 : index
    %8 = vector.load %arg5[%c0_4, %c0_5] : memref<64x1xf32, #tpu.memory_space<vmem>>, vector<64x1xf32>
    %9 = arith.maximumf %8, %7 : vector<64x1xf32>
    %c0_6 = arith.constant 0 : index
    %c0_7 = arith.constant 0 : index
    %10 = vector.load %arg6[%c0_6, %c0_7] : memref<64x1xf32, #tpu.memory_space<vmem>>, vector<64x1xf32>
    %11 = arith.subf %8, %9 : vector<64x1xf32>
    %12 = math.exp %11 : vector<64x1xf32>
    %13 = arith.mulf %10, %12 : vector<64x1xf32>
    %14 = vector.broadcast %9 : vector<64x1xf32> to vector<64x32xf32>
    %15 = arith.subf %3, %14 : vector<64x32xf32>
    %16 = math.exp %15 : vector<64x32xf32>
    %cst_8 = arith.constant dense<0.000000e+00> : vector<64xf32>
    %17 = vector.multi_reduction <add>, %16, %cst_8 [1] : vector<64x32xf32> to vector<64xf32>
    %18 = vector.shape_cast %17 : vector<64xf32> to vector<64x1xf32>
    %19 = arith.addf %13, %18 : vector<64x1xf32>
    %c0_9 = arith.constant 0 : index
    %c0_10 = arith.constant 0 : index
    %20 = vector.load %arg6[%c0_9, %c0_10] : memref<64x1xf32, #tpu.memory_space<vmem>>, vector<64x1xf32>
    tpu.vector_store %arg6[%c0_9, %c0_10], %19 {strides = array<i32>} : memref<64x1xf32, #tpu.memory_space<vmem>>, vector<64x1xf32>,
    %c0_11 = arith.constant 0 : index
    %c0_12 = arith.constant 0 : index
    %21 = vector.load %arg5[%c0_11, %c0_12] : memref<64x1xf32, #tpu.memory_space<vmem>>, vector<64x1xf32>
    tpu.vector_store %arg5[%c0_11, %c0_12], %9 {strides = array<i32>} : memref<64x1xf32, #tpu.memory_space<vmem>>, vector<64x1xf32>,
    %c0_13 = arith.constant 0 : index
    %c0_14 = arith.constant 0 : index
    %22 = vector.load %arg7[%c0_13, %c0_14] : memref<64x1xf32, #tpu.memory_space<vmem>>, vector<64x1xf32>
    %cst_15 = arith.constant dense<0.000000e+00> : vector<64xf32>
    %23 = vector.multi_reduction <add>, %5, %cst_15 [1] : vector<64x32xf32> to vector<64xf32>
    %24 = vector.shape_cast %23 : vector<64xf32> to vector<64x1xf32>
    %25 = arith.addf %22, %24 : vector<64x1xf32>
    %c0_16 = arith.constant 0 : index
    %c0_17 = arith.constant 0 : index
    %26 = vector.load %arg7[%c0_16, %c0_17] : memref<64x1xf32, #tpu.memory_space<vmem>>, vector<64x1xf32>
    tpu.vector_store %arg7[%c0_16, %c0_17], %25 {strides = array<i32>} : memref<64x1xf32, #tpu.memory_space<vmem>>, vector<64x1xf32>,
    %c0_18 = arith.constant 0 : index
    %c0_19 = arith.constant 0 : index
    %27 = vector.load %arg8[%c0_18, %c0_19] : memref<64x1xf32, #tpu.memory_space<vmem>>, vector<64x1xf32>
    %cst_20 = arith.constant dense<0.000000e+00> : vector<64xf32>
    %28 = vector.multi_reduction <add>, %4, %cst_20 [1] : vector<64x32xf32> to vector<64xf32>
    %29 = vector.shape_cast %28 : vector<64xf32> to vector<64x1xf32>
    %30 = arith.addf %27, %29 : vector<64x1xf32>
    %c0_21 = arith.constant 0 : index
    %c0_22 = arith.constant 0 : index
    %31 = vector.load %arg8[%c0_21, %c0_22] : memref<64x1xf32, #tpu.memory_space<vmem>>, vector<64x1xf32>
    tpu.vector_store %arg8[%c0_21, %c0_22], %30 {strides = array<i32>} : memref<64x1xf32, #tpu.memory_space<vmem>>, vector<64x1xf32>,
    %c0_i32_23 = arith.constant 0 : i32
    %32 = arith.cmpi eq, %arg1, %c0_i32_23 : i32
    %33 = arith.extui %32 : i1 to i32
    %c0_i32_24 = arith.constant 0 : i32
    %34 = arith.cmpi ne, %33, %c0_i32_24 : i32
    scf.if %34 {
      %c0_25 = arith.constant 0 : index
      %c0_26 = arith.constant 0 : index
      %35 = vector.load %arg5[%c0_25, %c0_26] : memref<64x1xf32, #tpu.memory_space<vmem>>, vector<64x1xf32>
      %c0_27 = arith.constant 0 : index
      %c0_28 = arith.constant 0 : index
      %36 = vector.load %arg6[%c0_27, %c0_28] : memref<64x1xf32, #tpu.memory_space<vmem>>, vector<64x1xf32>
      %37 = math.log %36 : vector<64x1xf32>
      %38 = arith.addf %35, %37 : vector<64x1xf32>
      %c0_29 = arith.constant 0 : index
      %c0_30 = arith.constant 0 : index
      %39 = vector.load %arg8[%c0_29, %c0_30] : memref<64x1xf32, #tpu.memory_space<vmem>>, vector<64x1xf32>
      %40 = arith.mulf %38, %39 : vector<64x1xf32>
      %c0_31 = arith.constant 0 : index
      %c0_32 = arith.constant 0 : index
      %41 = vector.load %arg7[%c0_31, %c0_32] : memref<64x1xf32, #tpu.memory_space<vmem>>, vector<64x1xf32>
      %42 = arith.subf %40, %41 : vector<64x1xf32>
      %c0_33 = arith.constant 0 : index
      %c0_34 = arith.constant 0 : index
      %43 = vector.load %arg4[%c0_33, %c0_34] : memref<64x1xf32, #tpu.memory_space<vmem>>, vector<64x1xf32>
      tpu.vector_store %arg4[%c0_33, %c0_34], %42 {strides = array<i32>} : memref<64x1xf32, #tpu.memory_space<vmem>>, vector<64x1xf32>,
    } else {
    }
    return
  }
  func.func @transform_0(%arg0: i32, %arg1: i32) -> (i32, i32) {
    %c0_i32 = arith.constant 0 : i32
    return %arg0, %arg1 : i32, i32
  }
  func.func @transform_1(%arg0: i32, %arg1: i32) -> (i32, i32) {
    %c0_i32 = arith.constant 0 : i32
    return %arg0, %arg1 : i32, i32
  }
  func.func @transform_2(%arg0: i32, %arg1: i32) -> (i32, i32) {
    %c0_i32 = arith.constant 0 : i32
    %c0_i32_0 = arith.constant 0 : i32
    return %arg0, %c0_i32 : i32, i32
  }
}

</mosaic_0001>

<bundles_post_ra>
// kernel: tpu_custom_call.1
= control target key start
LH: loop header
LB: loop body
LE: loop exit
PB: predicated region body
PF: predicated region fallthrough
CT: control target
= control target key end

     0   :  { %vm72_vm0 = vcmask 261120   ;;  %vm15_vm1 = vcmask 7168   ;;  %v502_v3 = vmov -inf   ;;  %v503_v17 = vmov 0   ;;  %s856_s0 = inlined_call_operand.vmem [shape: f32[64,32], index: 0, kind: input, shape index: {}]   ;;  %s857_s1 = inlined_call_operand.vmem [shape: f32[64,32], index: 1, kind: input, shape index: {}]   ;;  %s858_s2 = inlined_call_operand.vmem [shape: f32[64,1], index: 2, kind: output, shape index: {}]  }
   0x1   :  { %v523_v0 = vld [vmem:[%s856_s0] sm:$0xff]  ;;  %v528_v1 = vld [vmem:[%s856_s0 + $0x8] sm:$0xff]  ;;  %v533_v2 = vld [vmem:[%s856_s0 + $0x10] sm:$0xff]  ;;  %16 = vst.msk [vmem:[#allocation2] sm:$0xff] %vm15_vm1, %v502_v3  ;;  %452 = vset.pattern.permute.xlu0 %v503_v17  ;;  %453 = vset.pattern.permute.xlu1 %v503_v17  ;;  %v504_v18 = vmov 0.0  }
   0x2   :  { %17 = vst.msk [vmem:[#allocation2 + $0x8] sm:$0xff] %vm15_vm1, %v502_v3  ;;  %18 = vst.msk [vmem:[#allocation2 + $0x10] sm:$0xff] %vm15_vm1, %v502_v3  ;;  %v73_v4 = vsel %vm72_vm0, %v523_v0, -inf  ;;  %v79_v5 = vsel %vm72_vm0, %v533_v2, -inf  ;;  %v550_v6 = vld [vmem:[%s856_s0 + $0x18] sm:$0xff]  ;;  %v76_v7 = vsel %vm72_vm0, %v528_v1, -inf }
   0x3   :  { %19 = vst.msk [vmem:[#allocation2 + $0x18] sm:$0xff] %vm15_vm1, %v502_v3  ;;  %20 = vst.msk [vmem:[#allocation2 + $0x20] sm:$0xff] %vm15_vm1, %v502_v3  ;;  %74 = vmax.xlane.f32.xlu0 %v73_v4  ;;  %80 = vmax.xlane.f32.xlu1 %v79_v5  ;;  %v82_v8 = vsel %vm72_vm0, %v550_v6, -inf  ;;  %v559_v9 = vld [vmem:[%s856_s0 + $0x20] sm:$0xff]  ;;  %v564_v10 = vld [vmem:[%s856_s0 + $0x28] sm:$0xff] }
   0x4   :  { %21 = vst.msk [vmem:[#allocation2 + $0x28] sm:$0xff] %vm15_vm1, %v502_v3  ;;  %22 = vst.msk [vmem:[#allocation2 + $0x30] sm:$0xff] %vm15_vm1, %v502_v3  ;;  %v85_v11 = vsel %vm72_vm0, %v559_v9, -inf  ;;  %v88_v12 = vsel %vm72_vm0, %v564_v10, -inf  ;;  %v573_v13 = vld [vmem:[%s856_s0 + $0x30] sm:$0xff]  ;;  %v578_v14 = vld [vmem:[%s856_s0 + $0x38] sm:$0xff] }
   0x5   :  { %23 = vst.msk [vmem:[#allocation2 + $0x38] sm:$0xff] %vm15_vm1, %v502_v3  ;;  %v91_v15 = vsel %vm72_vm0, %v573_v13, -inf  ;;  %v94_v16 = vsel %vm72_vm0, %v578_v14, -inf  ;;  %41 = vst.msk [vmem:[#allocation5 + $0x8] sm:$0xff] %vm15_vm1, %v504_v18  ;;  %v690_v51 = vld [vmem:[%s857_s1] sm:$0xff]  ;;  %v698_v53 = vld [vmem:[%s857_s1 + $0x10] sm:$0xff] }
   0x6   :  { %24 = vst.msk [vmem:[#allocation3] sm:$0xff] %vm15_vm1, %v504_v18  ;;  %25 = vst.msk [vmem:[#allocation3 + $0x8] sm:$0xff] %vm15_vm1, %v504_v18  ;;  %v322_v52 = vsel %vm72_vm0, %v690_v51, 0.0  ;;  %v328_v54 = vsel %vm72_vm0, %v698_v53, 0.0  ;;  %v705_v55 = vld [vmem:[%s857_s1 + $0x20] sm:$0xff]  ;;  %v712_v57 = vld [vmem:[%s857_s1 + $0x8] sm:$0xff] }
   0x7   :  { %77 = vmax.xlane.f32.xlu0 %v76_v7  ;;  %83 = vmax.xlane.f32.xlu1 %v82_v8  ;;  %26 = vst.msk [vmem:[#allocation3 + $0x10] sm:$0xff] %vm15_vm1, %v504_v18  ;;  %27 = vst.msk [vmem:[#allocation3 + $0x18] sm:$0xff] %vm15_vm1, %v504_v18  ;;  %v334_v56 = vsel %vm72_vm0, %v705_v55, 0.0  ;;  %v325_v58 = vsel %vm72_vm0, %v712_v57, 0.0  ;;  %v719_v59 = vld [vmem:[%s857_s1 + $0x18] sm:$0xff]  ;;  %v726_v61 = vld [vmem:[%s857_s1 + $0x28] sm:$0xff] }
   0x8   :  { %28 = vst.msk [vmem:[#allocation3 + $0x20] sm:$0xff] %vm15_vm1, %v504_v18  ;;  %29 = vst.msk [vmem:[#allocation3 + $0x28] sm:$0xff] %vm15_vm1, %v504_v18  ;;  %v608_v19 = vld [vmem:[#allocation2] sm:$0xff]  ;;  %v331_v60 = vsel %vm72_vm0, %v719_v59, 0.0  ;;  %v337_v62 = vsel %vm72_vm0, %v726_v61, 0.0 }
   0x9   :  { %30 = vst.msk [vmem:[#allocation3 + $0x30] sm:$0xff] %vm15_vm1, %v504_v18  ;;  %31 = vst.msk [vmem:[#allocation3 + $0x38] sm:$0xff] %vm15_vm1, %v504_v18  ;;  %v610_v20 = vld [vmem:[#allocation2 + $0x10] sm:$0xff]  ;;  %v618_v25 = vld [vmem:[#allocation2 + $0x8] sm:$0xff] }
   0xa   :  { %32 = vst.msk [vmem:[#allocation4] sm:$0xff] %vm15_vm1, %v504_v18  ;;  %33 = vst.msk [vmem:[#allocation4 + $0x8] sm:$0xff] %vm15_vm1, %v504_v18  ;;  %v620_v26 = vld [vmem:[#allocation2 + $0x18] sm:$0xff]  ;;  %v637_v33 = vld [vmem:[#allocation2 + $0x20] sm:$0xff] }
   0xb   :  { %86 = vmax.xlane.f32.xlu0 %v85_v11  ;;  %89 = vmax.xlane.f32.xlu1 %v88_v12  ;;  %34 = vst.msk [vmem:[#allocation4 + $0x10] sm:$0xff] %vm15_vm1, %v504_v18  ;;  %35 = vst.msk [vmem:[#allocation4 + $0x18] sm:$0xff] %vm15_vm1, %v504_v18  ;;  %v639_v34 = vld [vmem:[#allocation2 + $0x28] sm:$0xff]  ;;  %v656_v41 = vld [vmem:[#allocation2 + $0x30] sm:$0xff] }
   0xc   :  { %36 = vst.msk [vmem:[#allocation4 + $0x20] sm:$0xff] %vm15_vm1, %v504_v18  ;;  %37 = vst.msk [vmem:[#allocation4 + $0x28] sm:$0xff] %vm15_vm1, %v504_v18  ;;  %v658_v42 = vld [vmem:[#allocation2 + $0x38] sm:$0xff] }
   0xd   :  { %38 = vst.msk [vmem:[#allocation4 + $0x30] sm:$0xff] %vm15_vm1, %v504_v18  ;;  %39 = vst.msk [vmem:[#allocation4 + $0x38] sm:$0xff] %vm15_vm1, %v504_v18 }
   0xe   :  { %40 = vst.msk [vmem:[#allocation5] sm:$0xff] %vm15_vm1, %v504_v18  ;;  %42 = vst.msk [vmem:[#allocation5 + $0x10] sm:$0xff] %vm15_vm1, %v504_v18 }
   0xf   :  { %92 = vmax.xlane.f32.xlu0 %v91_v15  ;;  %95 = vmax.xlane.f32.xlu1 %v94_v16  ;;  %43 = vst.msk [vmem:[#allocation5 + $0x18] sm:$0xff] %vm15_vm1, %v504_v18  ;;  %44 = vst.msk [vmem:[#allocation5 + $0x20] sm:$0xff] %vm15_vm1, %v504_v18 }
  0x10   :  { %45 = vst.msk [vmem:[#allocation5 + $0x28] sm:$0xff] %vm15_vm1, %v504_v18  ;;  %46 = vst.msk [vmem:[#allocation5 + $0x30] sm:$0xff] %vm15_vm1, %v504_v18 }
  0x11   :  { %47 = vst.msk [vmem:[#allocation5 + $0x38] sm:$0xff] %vm15_vm1, %v504_v18 }
  0x8c   :  { %v75_v21 = vpop.xlane.xlu0 %74  ;;  %v81_v22 = vpop.xlane.xlu1 %80 }
  0x8d   :  { %v613_v23 = vmax.f32 %v608_v19, %v75_v21  ;;  %v616_v24 = vmax.f32 %v610_v20, %v81_v22 }
  0x8f   :  { %v121_v27 = vsub.f32 %v608_v19, %v613_v23  ;;  %258 = vst.msk [vmem:[#allocation2] sm:$0xff] %vm15_vm1, %v613_v23  ;;  %155 = vperm.xlu0 %452, %v613_v23   ;;  %v123_v28 = vsub.f32 %v610_v20, %v616_v24  ;;  %260 = vst.msk [vmem:[#allocation2 + $0x10] sm:$0xff] %vm15_vm1, %v616_v24 }
  0x90   :  { %v78_v29 = vpop.xlane.xlu0 %77  ;;  %v84_v30 = vpop.xlane.xlu1 %83 }
  0x91   :  { %v632_v31 = vmax.f32 %v618_v25, %v78_v29  ;;  %v635_v32 = vmax.f32 %v620_v26, %v84_v30 }
  0x93   :  { %v122_v35 = vsub.f32 %v618_v25, %v632_v31  ;;  %259 = vst.msk [vmem:[#allocation2 + $0x8] sm:$0xff] %vm15_vm1, %v632_v31  ;;  %160 = vperm.xlu1 %453, %v632_v31   ;;  %v124_v36 = vsub.f32 %v620_v26, %v635_v32  ;;  %261 = vst.msk [vmem:[#allocation2 + $0x18] sm:$0xff] %vm15_vm1, %v635_v32 }
  0x94   :  { %v87_v37 = vpop.xlane.xlu0 %86  ;;  %v90_v38 = vpop.xlane.xlu1 %89 }
  0x95   :  { %v651_v39 = vmax.f32 %v637_v33, %v87_v37  ;;  %v654_v40 = vmax.f32 %v639_v34, %v90_v38 }
  0x97   :  { %165 = vperm.xlu1 %453, %v616_v24   ;;  %v125_v43 = vsub.f32 %v637_v33, %v651_v39  ;;  %262 = vst.msk [vmem:[#allocation2 + $0x20] sm:$0xff] %vm15_vm1, %v651_v39  ;;  %v126_v44 = vsub.f32 %v639_v34, %v654_v40  ;;  %263 = vst.msk [vmem:[#allocation2 + $0x28] sm:$0xff] %vm15_vm1, %v654_v40 }
  0x98   :  { %v93_v45 = vpop.xlane.xlu0 %92  ;;  %v96_v46 = vpop.xlane.xlu1 %95 }
  0x99   :  { %v670_v47 = vmax.f32 %v656_v41, %v93_v45  ;;  %v673_v48 = vmax.f32 %v658_v42, %v96_v46  ;;  %v137_v19 = vmul.f32 1.442695, %v125_v43  ;;  %v139_v25 = vmul.f32 1.442695, %v126_v44 }
  0x9b   :  { %170 = vperm.xlu1 %453, %v635_v32   ;;  %v127_v49 = vsub.f32 %v656_v41, %v670_v47  ;;  %264 = vst.msk [vmem:[#allocation2 + $0x30] sm:$0xff] %vm15_vm1, %v670_v47  ;;  %v128_v50 = vsub.f32 %v658_v42, %v673_v48  ;;  %265 = vst.msk [vmem:[#allocation2 + $0x38] sm:$0xff] %vm15_vm1, %v673_v48 }
  0x9d   :  { %v141_v26 = vmul.f32 1.442695, %v127_v49  ;;  %v143_v34 = vmul.f32 1.442695, %v128_v50 }
  0x9f   :  { %175 = vperm.xlu1 %453, %v651_v39   ;;  %v115_v39 = vld [vmem:[#allocation3 + $0x10] sm:$0xff] }
  0xa3   :  { %180 = vperm.xlu1 %453, %v654_v40  }
  0xa7   :  { %185 = vperm.xlu1 %453, %v670_v47  }
  0xab   :  { %190 = vperm.xlu1 %453, %v673_v48  }
  0xae   :  { %323 = vadd.xlane.f32.xlu0 %v322_v52 }
  0xb2   :  { %329 = vadd.xlane.f32.xlu0 %v328_v54 }
  0xb6   :  { %335 = vadd.xlane.f32.xlu0 %v334_v56 }
  0xcf   :  { %326 = vadd.xlane.f32.xlu1 %v325_v58 }
  0xd3   :  { %332 = vadd.xlane.f32.xlu1 %v331_v60 }
  0xd7   :  { %338 = vadd.xlane.f32.xlu1 %v337_v62 }
 0x10a   :  { %v156_v63 = vpop.permute.xlu0 %155 }
 0x10b   :  { %v193_v3 = vsub.f32 %v523_v0, %v156_v63 }
 0x10d   :  { %v201_v4 = vmul.f32 1.442695, %v193_v3 }
 0x10e   :  { %v161_v5 = vpop.permute.xlu1 %160 }
 0x10f   :  { %454 = vpow2.f32 %v201_v4  ;;  %v194_v7 = vsub.f32 %v528_v1, %v161_v5 }
 0x111   :  { %v203_v8 = vmul.f32 1.442695, %v194_v7 }
 0x112   :  { %v166_v11 = vpop.permute.xlu1 %165 }
 0x113   :  { %456 = vpow2.f32 %v203_v8  ;;  %v195_v12 = vsub.f32 %v533_v2, %v166_v11 }
 0x115   :  { %v205_v15 = vmul.f32 1.442695, %v195_v12 }
 0x116   :  { %v171_v16 = vpop.permute.xlu1 %170 }
 0x117   :  { %458 = vpow2.f32 %v205_v15  ;;  %v196_v17 = vsub.f32 %v550_v6, %v171_v16 }
 0x119   :  { %v207_v18 = vmul.f32 1.442695, %v196_v17 }
 0x11a   :  { %v176_v21 = vpop.permute.xlu1 %175 }
 0x11b   :  { %460 = vpow2.f32 %v207_v18  ;;  %v197_v22 = vsub.f32 %v559_v9, %v176_v21  ;;  %v62_v18 = vld [vmem:[%s857_s1 + $0x30] sm:$0xff] }
 0x11c   :  { %v455_v29 = vpop.eup %454 }
 0x11d   :  { %v209_v30 = vmul.f32 1.442695, %v197_v22  ;;  %v217_v37 = vsel %vm72_vm0, %v455_v29, 0.0  ;;  %v314_v22 = vld [vmem:[#allocation5] sm:$0xff]  ;;  %v340_v29 = vsel %vm72_vm0, %v62_v18, 0.0 }
 0x11e   :  { %v181_v38 = vpop.permute.xlu1 %180  ;;  %218 = vadd.xlane.f32.xlu1 %v217_v37 }
 0x11f   :  { %462 = vpow2.f32 %v209_v30  ;;  %v198_v45 = vsub.f32 %v564_v10, %v181_v38  ;;  %v64_v30 = vmul.f32 %v690_v51, %v523_v0  ;;  %v65_v0 = vmul.f32 %v712_v57, %v528_v1 }
 0x120   :  { %v457_v46 = vpop.eup %456  ;;  %v66_v51 = vmul.f32 %v698_v53, %v533_v2  ;;  %v68_v1 = vmul.f32 %v705_v55, %v559_v9 }
 0x121   :  { %v211_v52 = vmul.f32 1.442695, %v198_v45  ;;  %v220_v54 = vsel %vm72_vm0, %v457_v46, 0.0  ;;  %v63_v45 = vld [vmem:[%s857_s1 + $0x38] sm:$0xff] }
 0x122   :  { %221 = vadd.xlane.f32.xlu0 %v220_v54  ;;  %v186_v56 = vpop.permute.xlu1 %185  ;;  %v316_v54 = vld [vmem:[#allocation5 + $0x10] sm:$0xff]  ;;  %v286_v53 = vsel %vm72_vm0, %v68_v1, 0.0  ;;  %v71_v55 = vmul.f32 %v63_v45, %v578_v14 }
 0x123   :  { %464 = vpow2.f32 %v211_v52  ;;  %v199_v58 = vsub.f32 %v573_v13, %v186_v56  ;;  %v343_v56 = vsel %vm72_vm0, %v63_v45, 0.0 }
 0x124   :  { %v459_v60 = vpop.eup %458 }
 0x125   :  { %v213_v62 = vmul.f32 1.442695, %v199_v58  ;;  %v223_v63 = vsel %vm72_vm0, %v459_v60, 0.0  ;;  %v274_v58 = vsel %vm72_vm0, %v64_v30, 0.0  ;;  %v135_v30 = vmul.f32 1.442695, %v124_v36 }
 0x126   :  { %224 = vadd.xlane.f32.xlu0 %v223_v63  ;;  %v191_v3 = vpop.permute.xlu1 %190  ;;  %v318_v63 = vld [vmem:[#allocation5 + $0x20] sm:$0xff] }
 0x127   :  { %466 = vpow2.f32 %v213_v62  ;;  %v200_v4 = vsub.f32 %v578_v14, %v191_v3  ;;  %v277_v3 = vsel %vm72_vm0, %v65_v0, 0.0  ;;  %v129_v14 = vmul.f32 1.442695, %v121_v27  ;;  %v113_v27 = vld [vmem:[#allocation3] sm:$0xff] }
 0x128   :  { %v461_v5 = vpop.eup %460 }
 0x129   :  { %v215_v7 = vmul.f32 1.442695, %v200_v4  ;;  %v226_v8 = vsel %vm72_vm0, %v461_v5, 0.0  ;;  %v280_v4 = vsel %vm72_vm0, %v66_v51, 0.0  ;;  %v67_v5 = vmul.f32 %v719_v59, %v550_v6 }
 0x12a   :  { %227 = vadd.xlane.f32.xlu1 %v226_v8  ;;  %v69_v8 = vmul.f32 %v726_v61, %v564_v10  ;;  %v295_v59 = vsel %vm72_vm0, %v71_v55, 0.0  ;;  %v319_v61 = vld [vmem:[#allocation5 + $0x28] sm:$0xff] }
 0x12b   :  { %468 = vpow2.f32 %v215_v7  ;;  %v283_v2 = vsel %vm72_vm0, %v67_v5, 0.0 }
 0x12c   :  { %v463_v11 = vpop.eup %462  ;;  %v289_v6 = vsel %vm72_vm0, %v69_v8, 0.0  ;;  %470 = vpow2.f32 %v129_v14 }
 0x12d   :  { %v229_v12 = vsel %vm72_vm0, %v463_v11, 0.0  ;;  %v70_v11 = vmul.f32 %v62_v18, %v573_v13 }
 0x12e   :  { %230 = vadd.xlane.f32.xlu0 %v229_v12  ;;  %v315_v12 = vld [vmem:[#allocation5 + $0x8] sm:$0xff] }
 0x12f   :  { %v292_v9 = vsel %vm72_vm0, %v70_v11, 0.0  ;;  %v320_v11 = vld [vmem:[#allocation5 + $0x30] sm:$0xff] }
 0x130   :  { %v465_v15 = vpop.eup %464 }
 0x131   :  { %v232_v16 = vsel %vm72_vm0, %v465_v15, 0.0 }
 0x132   :  { %233 = vadd.xlane.f32.xlu1 %v232_v16 }
 0x134   :  { %v467_v17 = vpop.eup %466 }
 0x135   :  { %v235_v21 = vsel %vm72_vm0, %v467_v17, 0.0  ;;  %v317_v17 = vld [vmem:[#allocation5 + $0x18] sm:$0xff] }
 0x136   :  { %236 = vadd.xlane.f32.xlu0 %v235_v21 }
 0x137   :  { %v324_v37 = vpop.xlane.xlu0 %323 }
 0x138   :  { %v469_v38 = vpop.eup %468  ;;  %v346_v46 = vadd.f32 %v324_v37, %v314_v22  ;;  %v131_v22 = vmul.f32 1.442695, %v122_v35 }
 0x139   :  { %v238_v52 = vsel %vm72_vm0, %v469_v38, 0.0  ;;  %v471_v23 = vpop.eup %470  ;;  %v116_v38 = vld [vmem:[#allocation3 + $0x18] sm:$0xff] }
 0x13a   :  { %341 = vadd.xlane.f32.xlu0 %v340_v29  ;;  %239 = vadd.xlane.f32.xlu1 %v238_v52  ;;  %354 = vst.msk [vmem:[#allocation5] sm:$0xff] %vm15_vm1, %v346_v46  ;;  %472 = vpow2.f32 %v131_v22  ;;  %v133_v29 = vmul.f32 1.442695, %v123_v28  ;;  %v145_v31 = vmul.f32 %v471_v23, %v113_v27  ;;  %v114_v28 = vld [vmem:[#allocation3 + $0x8] sm:$0xff]  ;;  %v117_v46 = vld [vmem:[#allocation3 + $0x20] sm:$0xff]  ;;  %v268_v23 = vld [vmem:[#allocation4 + $0x10] sm:$0xff] }
 0x13b   :  { %v330_v60 = vpop.xlane.xlu0 %329  ;;  %v365_v27 = vld [vmem:[#allocation2] sm:$0xff] }
 0x13c   :  { %v348_v62 = vadd.f32 %v330_v60, %v316_v54  ;;  %474 = vpow2.f32 %v133_v29 }
 0x13d   :  { %476 = vpow2.f32 %v135_v30 }
 0x13e   :  { %344 = vadd.xlane.f32.xlu1 %v343_v56  ;;  %275 = vadd.xlane.f32.xlu0 %v274_v58  ;;  %356 = vst.msk [vmem:[#allocation5 + $0x10] sm:$0xff] %vm15_vm1, %v348_v62  ;;  %478 = vpow2.f32 %v137_v19  ;;  %v118_v58 = vld [vmem:[#allocation3 + $0x28] sm:$0xff] }
 0x13f   :  { %v336_v57 = vpop.xlane.xlu0 %335  ;;  %480 = vpow2.f32 %v139_v25  ;;  %v267_v19 = vld [vmem:[#allocation4 + $0x8] sm:$0xff] }
 0x140   :  { %v350_v7 = vadd.f32 %v336_v57, %v318_v63  ;;  %482 = vpow2.f32 %v141_v26 }
 0x141   :  { %484 = vpow2.f32 %v143_v34  ;;  %v367_v34 = vld [vmem:[#allocation2 + $0x10] sm:$0xff] }
 0x142   :  { %278 = vadd.xlane.f32.xlu1 %v277_v3  ;;  %281 = vadd.xlane.f32.xlu0 %v280_v4  ;;  %358 = vst.msk [vmem:[#allocation5 + $0x20] sm:$0xff] %vm15_vm1, %v350_v7  ;;  %v119_v3 = vld [vmem:[#allocation3 + $0x30] sm:$0xff] }
 0x146   :  { %284 = vadd.xlane.f32.xlu1 %v283_v2  ;;  %287 = vadd.xlane.f32.xlu0 %v286_v53  ;;  %v120_v2 = vld [vmem:[#allocation3 + $0x38] sm:$0xff] }
 0x147   :  { %v473_v20 = vpop.eup %472 }
 0x148   :  { %v146_v32 = vmul.f32 %v473_v20, %v114_v28 }
 0x149   :  { %v475_v33 = vpop.eup %474 }
 0x14a   :  { %290 = vadd.xlane.f32.xlu1 %v289_v6  ;;  %293 = vadd.xlane.f32.xlu0 %v292_v9  ;;  %v147_v40 = vmul.f32 %v475_v33, %v115_v39  ;;  %v477_v44 = vpop.eup %476  ;;  %v270_v39 = vld [vmem:[#allocation4 + $0x20] sm:$0xff] }
 0x14b   :  { %v148_v47 = vmul.f32 %v477_v44, %v116_v38  ;;  %v479_v49 = vpop.eup %478  ;;  %v405_v44 = vld [vmem:[#allocation5] sm:$0xff] }
 0x14c   :  { %v149_v42 = vmul.f32 %v479_v49, %v117_v46  ;;  %v481_v48 = vpop.eup %480 }
 0x14d   :  { %v150_v60 = vmul.f32 %v481_v48, %v118_v58  ;;  %v483_v62 = vpop.eup %482  ;;  %v271_v48 = vld [vmem:[#allocation4 + $0x28] sm:$0xff] }
 0x14e   :  { %296 = vadd.xlane.f32.xlu1 %v295_v59  ;;  %v151_v1 = vmul.f32 %v483_v62, %v119_v3  ;;  %v485_v57 = vpop.eup %484  ;;  %v369_v62 = vld [vmem:[#allocation2 + $0x20] sm:$0xff] }
 0x14f   :  { %v152_v6 = vmul.f32 %v485_v57, %v120_v2 }
 0x158   :  { %v327_v15 = vpop.xlane.xlu1 %326 }
 0x159   :  { %v347_v16 = vadd.f32 %v327_v15, %v315_v12 }
 0x15b   :  { %355 = vst.msk [vmem:[#allocation5 + $0x8] sm:$0xff] %vm15_vm1, %v347_v16 }
 0x15c   :  { %v333_v10 = vpop.xlane.xlu1 %332 }
 0x15d   :  { %v349_v13 = vadd.f32 %v333_v10, %v317_v17  ;;  %v321_v17 = vld [vmem:[#allocation5 + $0x38] sm:$0xff]  ;;  %v266_v10 = vld [vmem:[#allocation4] sm:$0xff] }
 0x15f   :  { %357 = vst.msk [vmem:[#allocation5 + $0x18] sm:$0xff] %vm15_vm1, %v349_v13 }
 0x160   :  { %v339_v18 = vpop.xlane.xlu1 %338 }
 0x161   :  { %v351_v21 = vadd.f32 %v339_v18, %v319_v61 }
 0x162   :  { %v406_v58 = vld [vmem:[#allocation5 + $0x8] sm:$0xff] }
 0x163   :  { %359 = vst.msk [vmem:[#allocation5 + $0x28] sm:$0xff] %vm15_vm1, %v351_v21 }
 0x1a7   :  { %v219_v24 = vpop.xlane.xlu1 %218 }
 0x1a8   :  { %v241_v35 = vadd.f32 %v219_v24, %v145_v31 }
 0x1aa   :  { %250 = vst.msk [vmem:[#allocation3] sm:$0xff] %vm15_vm1, %v241_v35 }
 0x1ab   :  { %v222_v36 = vpop.xlane.xlu0 %221 }
 0x1ac   :  { %v242_v43 = vadd.f32 %v222_v36, %v146_v32  ;;  %v269_v36 = vld [vmem:[#allocation4 + $0x18] sm:$0xff] }
 0x1ae   :  { %251 = vst.msk [vmem:[#allocation3 + $0x8] sm:$0xff] %vm15_vm1, %v242_v43  ;;  %v366_v43 = vld [vmem:[#allocation2 + $0x8] sm:$0xff] }
 0x1af   :  { %v225_v37 = vpop.xlane.xlu0 %224 }
 0x1b0   :  { %v243_v41 = vadd.f32 %v225_v37, %v147_v40 }
 0x1b1   :  { %v373_v54 = vld [vmem:[#allocation3] sm:$0xff] }
 0x1b2   :  { %252 = vst.msk [vmem:[#allocation3 + $0x10] sm:$0xff] %vm15_vm1, %v243_v41  ;;  %486 = vlog2.f32 %v373_v54 }
 0x1b3   :  { %v228_v45 = vpop.xlane.xlu1 %227 }
 0x1b4   :  { %v244_v52 = vadd.f32 %v228_v45, %v148_v47 }
 0x1b5   :  { %v374_v50 = vld [vmem:[#allocation3 + $0x8] sm:$0xff] }
 0x1b6   :  { %253 = vst.msk [vmem:[#allocation3 + $0x18] sm:$0xff] %vm15_vm1, %v244_v52  ;;  %488 = vlog2.f32 %v374_v50  ;;  %v272_v50 = vld [vmem:[#allocation4 + $0x30] sm:$0xff] }
 0x1b7   :  { %v231_v56 = vpop.xlane.xlu0 %230 }
 0x1b8   :  { %v245_v0 = vadd.f32 %v231_v56, %v149_v42  ;;  %v368_v56 = vld [vmem:[#allocation2 + $0x18] sm:$0xff] }
 0x1b9   :  { %v375_v51 = vld [vmem:[#allocation3 + $0x10] sm:$0xff] }
 0x1ba   :  { %254 = vst.msk [vmem:[#allocation3 + $0x20] sm:$0xff] %vm15_vm1, %v245_v0  ;;  %490 = vlog2.f32 %v375_v51  ;;  %v407_v0 = vld [vmem:[#allocation5 + $0x10] sm:$0xff] }
 0x1bb   :  { %v234_v63 = vpop.xlane.xlu1 %233 }
 0x1bc   :  { %v246_v4 = vadd.f32 %v234_v63, %v150_v60 }
 0x1bd   :  { %v376_v5 = vld [vmem:[#allocation3 + $0x18] sm:$0xff] }
 0x1be   :  { %255 = vst.msk [vmem:[#allocation3 + $0x28] sm:$0xff] %vm15_vm1, %v246_v4  ;;  %492 = vlog2.f32 %v376_v5 }
 0x1bf   :  { %v237_v7 = vpop.xlane.xlu0 %236  ;;  %v487_v15 = vpop.eup %486 }
 0x1c0   :  { %v247_v53 = vadd.f32 %v237_v7, %v151_v1  ;;  %v382_v14 = vmul.f32 0.6931472, %v487_v15  ;;  %v370_v15 = vld [vmem:[#allocation2 + $0x28] sm:$0xff] }
 0x1c1   :  { %v377_v8 = vld [vmem:[#allocation3 + $0x20] sm:$0xff] }
 0x1c2   :  { %494 = vlog2.f32 %v377_v8  ;;  %256 = vst.msk [vmem:[#allocation3 + $0x30] sm:$0xff] %vm15_vm1, %v247_v53  ;;  %v397_v35 = vadd.f32 %v382_v14, %v365_v27  ;;  %v371_v14 = vld [vmem:[#allocation2 + $0x30] sm:$0xff] }
 0x1c3   :  { %v240_v9 = vpop.xlane.xlu1 %239  ;;  %v342_v55 = vpop.xlane.xlu0 %341 }
 0x1c4   :  { %v248_v59 = vadd.f32 %v240_v9, %v152_v6  ;;  %v352_v12 = vadd.f32 %v342_v55, %v320_v11  ;;  %v489_v13 = vpop.eup %488  ;;  %v413_v46 = vmul.f32 %v405_v44, %v397_v35  ;;  %v273_v6 = vld [vmem:[#allocation4 + $0x38] sm:$0xff] }
 0x1c5   :  { %v378_v16 = vld [vmem:[#allocation3 + $0x28] sm:$0xff]  ;;  %v384_v25 = vmul.f32 0.6931472, %v489_v13  ;;  %v408_v9 = vld [vmem:[#allocation5 + $0x18] sm:$0xff] }
 0x1c6   :  { %496 = vlog2.f32 %v378_v16  ;;  %257 = vst.msk [vmem:[#allocation3 + $0x38] sm:$0xff] %vm15_vm1, %v248_v59  ;;  %360 = vst.msk [vmem:[#allocation5 + $0x30] sm:$0xff] %vm15_vm1, %v352_v12  ;;  %v409_v16 = vld [vmem:[#allocation5 + $0x20] sm:$0xff]  ;;  %v372_v35 = vld [vmem:[#allocation2 + $0x38] sm:$0xff] }
 0x1c7   :  { %v345_v61 = vpop.xlane.xlu1 %344  ;;  %v276_v18 = vpop.xlane.xlu0 %275  ;;  %v398_v38 = vadd.f32 %v384_v25, %v366_v43  ;;  %v410_v25 = vld [vmem:[#allocation5 + $0x28] sm:$0xff] }
 0x1c8   :  { %v491_v21 = vpop.eup %490  ;;  %v353_v22 = vadd.f32 %v345_v61, %v321_v17  ;;  %v298_v29 = vadd.f32 %v276_v18, %v266_v10 }
 0x1c9   :  { %v379_v30 = vld [vmem:[#allocation3 + $0x30] sm:$0xff]  ;;  %v386_v31 = vmul.f32 0.6931472, %v491_v21  ;;  %v414_v63 = vmul.f32 %v406_v58, %v398_v38 }
 0x1ca   :  { %498 = vlog2.f32 %v379_v30  ;;  %361 = vst.msk [vmem:[#allocation5 + $0x38] sm:$0xff] %vm15_vm1, %v353_v22  ;;  %306 = vst.msk [vmem:[#allocation4] sm:$0xff] %vm15_vm1, %v298_v29 }
 0x1cb   :  { %v279_v20 = vpop.xlane.xlu1 %278  ;;  %v282_v24 = vpop.xlane.xlu0 %281  ;;  %v399_v41 = vadd.f32 %v386_v31, %v367_v34 }
 0x1cc   :  { %v493_v28 = vpop.eup %492  ;;  %v299_v26 = vadd.f32 %v279_v20, %v267_v19  ;;  %v300_v32 = vadd.f32 %v282_v24, %v268_v23 }
 0x1cd   :  { %v380_v33 = vld [vmem:[#allocation3 + $0x38] sm:$0xff]  ;;  %v388_v37 = vmul.f32 0.6931472, %v493_v28  ;;  %v415_v3 = vmul.f32 %v407_v0, %v399_v41  ;;  %v411_v31 = vld [vmem:[#allocation5 + $0x30] sm:$0xff] }
 0x1ce   :  { %500 = vlog2.f32 %v380_v33  ;;  %307 = vst.msk [vmem:[#allocation4 + $0x8] sm:$0xff] %vm15_vm1, %v299_v26  ;;  %308 = vst.msk [vmem:[#allocation4 + $0x10] sm:$0xff] %vm15_vm1, %v300_v32 }
 0x1cf   :  { %v495_v40 = vpop.eup %494  ;;  %v285_v47 = vpop.xlane.xlu1 %284  ;;  %v400_v4 = vadd.f32 %v388_v37, %v368_v56 }
 0x1d0   :  { %v288_v49 = vpop.xlane.xlu0 %287  ;;  %v390_v45 = vmul.f32 0.6931472, %v495_v40  ;;  %v301_v52 = vadd.f32 %v285_v47, %v269_v36 }
 0x1d1   :  { %v302_v54 = vadd.f32 %v288_v49, %v270_v39  ;;  %v421_v42 = vld [vmem:[#allocation4] sm:$0xff]  ;;  %v416_v17 = vmul.f32 %v408_v9, %v400_v4  ;;  %v412_v43 = vld [vmem:[#allocation5 + $0x38] sm:$0xff] }
 0x1d2   :  { %v429_v51 = vsub.f32 %v413_v46, %v421_v42  ;;  %309 = vst.msk [vmem:[#allocation4 + $0x18] sm:$0xff] %vm15_vm1, %v301_v52  ;;  %v401_v7 = vadd.f32 %v390_v45, %v369_v62 }
 0x1d3   :  { %310 = vst.msk [vmem:[#allocation4 + $0x20] sm:$0xff] %vm15_vm1, %v302_v54  ;;  %v497_v60 = vpop.eup %496  ;;  %v291_v5 = vpop.xlane.xlu1 %290 }
 0x1d4   :  { %v294_v1 = vpop.xlane.xlu0 %293  ;;  %v392_v57 = vmul.f32 0.6931472, %v497_v60  ;;  %437 = vst.msk [vmem:[%s858_s2] sm:$0xff] %vm15_vm1, %v429_v51  ;;  %v303_v2 = vadd.f32 %v291_v5, %v271_v48  ;;  %v417_v61 = vmul.f32 %v409_v16, %v401_v7 }
 0x1d5   :  { %v304_v53 = vadd.f32 %v294_v1, %v272_v50  ;;  %v422_v8 = vld [vmem:[#allocation4 + $0x8] sm:$0xff]  ;;  %v423_v11 = vld [vmem:[#allocation4 + $0x10] sm:$0xff] }
 0x1d6   :  { %v430_v55 = vsub.f32 %v414_v63, %v422_v8  ;;  %v431_v59 = vsub.f32 %v415_v3, %v423_v11  ;;  %311 = vst.msk [vmem:[#allocation4 + $0x28] sm:$0xff] %vm15_vm1, %v303_v2  ;;  %v402_v18 = vadd.f32 %v392_v57, %v370_v15 }
 0x1d7   :  { %312 = vst.msk [vmem:[#allocation4 + $0x30] sm:$0xff] %vm15_vm1, %v304_v53  ;;  %v499_v12 = vpop.eup %498  ;;  %v297_v10 = vpop.xlane.xlu1 %296 }
 0x1d8   :  { %v394_v13 = vmul.f32 0.6931472, %v499_v12  ;;  %438 = vst.msk [vmem:[%s858_s2 + $0x8] sm:$0xff] %vm15_vm1, %v430_v55  ;;  %439 = vst.msk [vmem:[%s858_s2 + $0x10] sm:$0xff] %vm15_vm1, %v431_v59  ;;  %v305_v21 = vadd.f32 %v297_v10, %v273_v6  ;;  %v418_v28 = vmul.f32 %v410_v25, %v402_v18 }
 0x1d9   :  { %v424_v22 = vld [vmem:[#allocation4 + $0x18] sm:$0xff] }
 0x1da   :  { %v425_v29 = vld [vmem:[#allocation4 + $0x20] sm:$0xff]  ;;  %v403_v30 = vadd.f32 %v394_v13, %v371_v14  ;;  %v432_v19 = vsub.f32 %v416_v17, %v424_v22  ;;  %313 = vst.msk [vmem:[#allocation4 + $0x38] sm:$0xff] %vm15_vm1, %v305_v21 }
 0x1db   :  { %v433_v23 = vsub.f32 %v417_v61, %v425_v29  ;;  %v501_v27 = vpop.eup %500 }
 0x1dc   :  { %v419_v20 = vmul.f32 %v411_v31, %v403_v30  ;;  %v396_v24 = vmul.f32 0.6931472, %v501_v27  ;;  %440 = vst.msk [vmem:[%s858_s2 + $0x18] sm:$0xff] %vm15_vm1, %v432_v19 }
 0x1dd   :  { %441 = vst.msk [vmem:[%s858_s2 + $0x20] sm:$0xff] %vm15_vm1, %v433_v23  ;;  %v426_v26 = vld [vmem:[#allocation4 + $0x28] sm:$0xff] }
 0x1de   :  { %v427_v32 = vld [vmem:[#allocation4 + $0x30] sm:$0xff]  ;;  %v404_v33 = vadd.f32 %v396_v24, %v372_v35  ;;  %v434_v36 = vsub.f32 %v418_v28, %v426_v26 }
 0x1df   :  { %v435_v39 = vsub.f32 %v419_v20, %v427_v32 }
 0x1e0   :  { %v420_v34 = vmul.f32 %v412_v43, %v404_v33  ;;  %442 = vst.msk [vmem:[%s858_s2 + $0x28] sm:$0xff] %vm15_vm1, %v434_v36 }
 0x1e1   :  { %443 = vst.msk [vmem:[%s858_s2 + $0x30] sm:$0xff] %vm15_vm1, %v435_v39  ;;  %v428_v40 = vld [vmem:[#allocation4 + $0x38] sm:$0xff] }
 0x1e2   :  { %v436_v44 = vsub.f32 %v420_v34, %v428_v40 }
 0x1e4   :  { %444 = vst.msk [vmem:[%s858_s2 + $0x38] sm:$0xff] %vm15_vm1, %v436_v44 }

</bundles_post_ra>
